<compile_context>
chip_gen: v5e
topology: v5e:2x2
jax: 0.10.0
libtpu: 0.0.40
codegen_flags: <defaults>
</compile_context>

<pallas_src>
import functools
import numpy as np
import jax
import jax.numpy as jnp
from jax import lax
from jax.experimental import pallas as pl
from jax.experimental.pallas import tpu as pltpu


# ----------------------------- helpers ------------------------------------
def build_pos_enc(max_len, d_model):
    """Same construction as PositionalAgentEncoding.build_pos_enc."""
    pe = np.zeros((max_len, d_model), dtype=np.float32)
    position = np.arange(0, max_len, dtype=np.float32)[:, None]
    div_term = np.exp(
        np.arange(0, d_model, 2, dtype=np.float32) * (-np.log(10000.0) / d_model)
    )
    pe[:, 0::2] = np.sin(position * div_term)
    pe[:, 1::2] = np.cos(position * div_term)
    return jnp.asarray(pe)


# --------------------------- fused kernel -----------------------------------
def fused_kernel(n_qz, n_corr, pad_lanes,
                 x_ref, past_ref,
                 w_eff_ref, b_eff_ref,
                 w_mlp_past_ref, w_x_mlp_ref, b_h_ref,
                 w_qz_ref, b_qz_ref,
                 out_ref):
    # Per grid step: one batch of N agents.
    x = x_ref[...]                                    # (N, Kp) bf16, zero-padded K

    # (1) Front end fully folded: ftraj = x @ W_eff + b_eff   (f32 accumulate)
    ftraj = jnp.dot(x, w_eff_ref[...],
                    preferred_element_type=jnp.float32) + b_eff_ref[...]   # (N, D)
    # TODO(synk): nn.Dropout(p=0.1) after the pos encoder omitted (eval mode).

    # (2) F.normalize(p=2, dim=-1): EUP rsqrt instead of sqrt + divide.
    #     rsqrt(max(sumsq, eps^2)) == 1 / max(||x||, eps) with eps = 1e-12.
    sumsq = jnp.sum(ftraj * ftraj, axis=-1, keepdims=True)
    q = ftraj * lax.rsqrt(jnp.maximum(sumsq, 1e-24))

    # (3) feat_corr: ONLY this batch's diagonal N x N block (no (BN,BN) gram).
    corr = lax.dot_general(q, q, (((1,), (1,)), ((), ())),
                           preferred_element_type=jnp.float32)             # (N, N)

    # (4) out_mlp (Linear + ReLU) + qz_layer.  The [past, ftraj, ftraj_inter]
    #     lane concat is replaced by a weight-row split, and the ftraj branch
    #     is folded through to x (W_x_mlp), so this chain does not wait on
    #     the ftraj MXU pop.
    # TODO(synk): ftraj_inter == ftraj pass-through (MS_HGNN_oridinary absent).
    h = jnp.dot(past_ref[...], w_mlp_past_ref[...],
                preferred_element_type=jnp.float32)
    h = h + jnp.dot(x, w_x_mlp_ref[...], preferred_element_type=jnp.float32)
    h = jnp.maximum(h + b_h_ref[...], 0.0)                                 # (N, 128)
    qz = jnp.dot(h.astype(w_qz_ref.dtype), w_qz_ref[...],
                 preferred_element_type=jnp.float32) + b_qz_ref[...]       # (N, n_qz)

    # (5) Pack qz + corr into one lane-dense 128-wide slab -> single unmasked
    #     full-lane store (wrapper slices the real lanes back out).
    parts = [qz, corr]
    if pad_lanes > 0:
        parts.append(jnp.zeros((qz.shape[0], pad_lanes), jnp.float32))
    out_ref[...] = jnp.concatenate(parts, axis=-1)


# ----------------------------- wrapper -------------------------------------
def future_encoder_forward(inputs, past_feature, params, pe, *, B, N, L, D, zdim,
                           compute_dtype=jnp.bfloat16):
    (W_in, b_in, W_pos, b_pos, W_fc2, b_fc2, W_mlp, b_mlp, W_qz, b_qz) = params
    BN = B * N
    in_dim = inputs.shape[-1]
    P = past_feature.shape[-1]            # scale_num * D = 2D
    HI = lax.Precision.HIGHEST            # constant folding done once, keep exact

    # ---- constant folding (input independent, tiny, f32) -------------------
    # input_fc + pos-concat-fc:
    w_px, w_pp = W_pos[:D, :], W_pos[D:, :]
    W_comb = jnp.dot(W_in, w_px, precision=HI)                     # (in_dim, D)
    b_comb = (jnp.dot(pe[:L], w_pp, precision=HI)                  # (L, D)
              + jnp.dot(b_in, w_px, precision=HI) + b_pos)
    # ... folded through input_fc2 (no nonlinearity in between):
    W_fc2_r = W_fc2.reshape(L, D, D)
    W_eff = jnp.einsum('id,ldo->lio', W_comb, W_fc2_r,
                       precision=HI).reshape(L * in_dim, D)         # (L*in_dim, D)
    b_eff = jnp.dot(b_comb.reshape(1, L * D), W_fc2, precision=HI) + b_fc2  # (1, D)

    # out_mlp weight-row split; ftraj_inter == ftraj pass-through (see TODO).
    W_mlp_past = W_mlp[:P, :]                                       # (2D, 128)
    W_mlp_ftraj = W_mlp[P:P + D, :] + W_mlp[P + D:, :]              # (D, 128)
    # Fold the ftraj -> out_mlp branch all the way through to x:
    W_x_mlp = jnp.dot(W_eff, W_mlp_ftraj, precision=HI)             # (L*in_dim, 128)
    b_h = jnp.dot(b_eff, W_mlp_ftraj, precision=HI) + b_mlp         # (1, 128)

    # ---- pad x contraction dim to 128 (fills MXU; zero rows are no-ops) ----
    Kp = max(128, 128 * pl.cdiv(L * in_dim, 128))
    x3 = jnp.pad(inputs.reshape(B, N, L * in_dim),
                 ((0, 0), (0, 0), (0, Kp - L * in_dim)))
    W_eff_p = jnp.pad(W_eff, ((0, Kp - L * in_dim), (0, 0)))
    W_x_mlp_p = jnp.pad(W_x_mlp, ((0, Kp - L * in_dim), (0, 0)))
    past3 = past_feature.reshape(B, N, P)

    # ---- bf16 matmul operands, f32 accumulation / biases --------------------
    x3 = x3.astype(compute_dtype)
    past3 = past3.astype(compute_dtype)
    W_eff_p = W_eff_p.astype(compute_dtype)
    W_x_mlp_p = W_x_mlp_p.astype(compute_dtype)
    W_mlp_past_c = W_mlp_past.astype(compute_dtype)
    W_qz_c = W_qz.astype(compute_dtype)
    b_eff = b_eff.astype(jnp.float32)
    b_h = b_h.astype(jnp.float32)
    b_qz_f = b_qz.astype(jnp.float32)

    # ---- packed, lane-dense output slab -------------------------------------
    n_qz = 2 * zdim
    OUT = 128 * pl.cdiv(n_qz + N, 128)
    pad_lanes = OUT - n_qz - N

    kernel = functools.partial(fused_kernel, n_qz, N, pad_lanes)
    slab = pl.pallas_call(
        kernel,
        # Grid over batch: each step handles one batch's N agents, so the
        # corr block is per-batch by construction.  Weights have constant
        # index_maps (DMA'd once, VMEM-resident); x/past tiles stream.
        # At real sizes the per-step slab stays tiny (<<32 MiB scoped VMEM
        # even on v7x) since the (BN,BN) gram matrix is never formed.
        grid=(B,),
        in_specs=[
            pl.BlockSpec((None, N, Kp), lambda b: (b, 0, 0)),     # x
            pl.BlockSpec((None, N, P), lambda b: (b, 0, 0)),      # past_feature
            pl.BlockSpec((Kp, D), lambda b: (0, 0)),              # W_eff
            pl.BlockSpec((1, D), lambda b: (0, 0)),               # b_eff
            pl.BlockSpec((P, 128), lambda b: (0, 0)),             # W_mlp_past
            pl.BlockSpec((Kp, 128), lambda b: (0, 0)),            # W_x_mlp
            pl.BlockSpec((1, 128), lambda b: (0, 0)),             # b_h
            pl.BlockSpec((128, n_qz), lambda b: (0, 0)),          # W_qz
            pl.BlockSpec((1, n_qz), lambda b: (0, 0)),            # b_qz
        ],
        out_specs=pl.BlockSpec((None, N, OUT), lambda b: (b, 0, 0)),
        out_shape=jax.ShapeDtypeStruct((B, N, OUT), jnp.float32),
        compiler_params=pltpu.CompilerParams(
            dimension_semantics=("parallel",)),
    )(x3, past3, W_eff_p, b_eff, W_mlp_past_c, W_x_mlp_p, b_h, W_qz_c, b_qz_f)

    qz = slab[:, :, :n_qz].reshape(BN, n_qz)
    corr = slab[:, :, n_qz:n_qz + N]                               # (B, N, N)
    return qz, corr


# --------------------------- pure-JAX reference -----------------------------
def reference_forward(inputs, past_feature, params, pe, *, B, N, L, D, zdim):
    (W_in, b_in, W_pos, b_pos, W_fc2, b_fc2, W_mlp, b_mlp, W_qz, b_qz) = params
    BN = B * N
    tf_in = inputs.reshape(BN * L, -1) @ W_in + b_in
    pe_t = jnp.tile(pe[:L], (BN, 1))
    tf_pos = jnp.concatenate([tf_in, pe_t], axis=-1) @ W_pos + b_pos
    ftraj = tf_pos.reshape(BN, L * D) @ W_fc2 + b_fc2
    q = ftraj / jnp.maximum(jnp.linalg.norm(ftraj, axis=-1, keepdims=True), 1e-12)
    qb = q.reshape(B, N, D)
    corr = jnp.einsum('bnd,bmd->bnm', qb, qb)
    ftraj_inter = ftraj              # TODO(synk): MS_HGNN_oridinary pass-through
    final = jnp.concatenate([ftraj, ftraj_inter], axis=-1)
    h = jnp.concatenate([past_feature, final], axis=-1)
    h = jnp.maximum(h @ W_mlp + b_mlp, 0.0)
    return h @ W_qz + b_qz, corr


# ------------------------------- main ---------------------------------------
if __name__ == "__main__":
    # "args": hidden_dim=32, future_length=8, hyper_scales=[], zdim=16
    B, N, L = 2, 4, 8          # batch_size, agent_num, future_length
    D = 32                     # model_dim
    zdim = 16
    in_dim = 6                 # NODE_DIM * 2
    scale_num = 2              # 2 + len(hyper_scales), hyper_scales=[]
    BN = B * N

    key = jax.random.PRNGKey(0)
    ks = jax.random.split(key, 12)

    def init(k, shape, scale=0.05):
        return scale * jax.random.normal(k, shape, dtype=jnp.float32)

    W_in  = init(ks[0], (in_dim, D));              b_in  = init(ks[1], (1, D))
    W_pos = init(ks[2], (2 * D, D));               b_pos = init(ks[3], (1, D))
    W_fc2 = init(ks[4], (L * D, D));               b_fc2 = init(ks[5], (1, D))
    W_mlp = init(ks[6], (scale_num * 2 * D, 128)); b_mlp = init(ks[7], (1, 128))
    W_qz  = init(ks[8], (128, 2 * zdim));          b_qz  = init(ks[9], (1, 2 * zdim))
    params = (W_in, b_in, W_pos, b_pos, W_fc2, b_fc2, W_mlp, b_mlp, W_qz, b_qz)

    pe = build_pos_enc(200, D)

    inputs = jax.random.normal(ks[10], (BN, L, in_dim), dtype=jnp.float32)
    past_feature = jax.random.normal(ks[11], (BN, scale_num * D), dtype=jnp.float32)

    qz, corr = future_encoder_forward(inputs, past_feature, params, pe,
                                      B=B, N=N, L=L, D=D, zdim=zdim)
    qz = jax.block_until_ready(qz)
    corr = jax.block_until_ready(corr)

    qz_ref, corr_ref = reference_forward(inputs, past_feature, params, pe,
                                         B=B, N=N, L=L, D=D, zdim=zdim)
    # bf16 matmul operands (f32 accumulation) -> looser tolerance than the
    # previous all-f32 version.
    np.testing.assert_allclose(np.asarray(qz), np.asarray(qz_ref),
                               rtol=3e-2, atol=3e-2)
    np.testing.assert_allclose(np.asarray(corr), np.asarray(corr_ref),
                               rtol=3e-2, atol=3e-2)

    print("KERNEL_OK")
</pallas_src>

<mosaic_0001>
module attributes {stable_mosaic.version = 11 : i64} {
  func.func @fused_kernel(%arg0: i32, %arg1: memref<1x4x128xbf16, #tpu.memory_space<vmem>>, %arg2: memref<1x4x64xbf16, #tpu.memory_space<vmem>>, %arg3: memref<128x32xbf16, #tpu.memory_space<vmem>>, %arg4: memref<1x32xf32, #tpu.memory_space<vmem>>, %arg5: memref<64x128xbf16, #tpu.memory_space<vmem>>, %arg6: memref<128x128xbf16, #tpu.memory_space<vmem>>, %arg7: memref<1x128xf32, #tpu.memory_space<vmem>>, %arg8: memref<128x32xbf16, #tpu.memory_space<vmem>>, %arg9: memref<1x32xf32, #tpu.memory_space<vmem>>, %arg10: memref<1x4x128xf32, #tpu.memory_space<vmem>>) attributes {dimension_semantics = [#tpu.dimension_semantics<parallel>], iteration_bounds = array<i64: 2>, scalar_prefetch = 0 : i64, scratch_operands = 0 : i64, tpu.core_type = #tpu.core_type<tc>, window_params = [{transform_indices = @transform_0, window_bounds = array<i64: 1, 4, 128>}, {transform_indices = @transform_1, window_bounds = array<i64: 1, 4, 64>}, {pipeline_mode = #tpu.pipeline_mode<synchronous>, transform_indices = @transform_2, window_bounds = array<i64: 128, 32>}, {pipeline_mode = #tpu.pipeline_mode<synchronous>, transform_indices = @transform_3, window_bounds = array<i64: 1, 32>}, {pipeline_mode = #tpu.pipeline_mode<synchronous>, transform_indices = @transform_4, window_bounds = array<i64: 64, 128>}, {pipeline_mode = #tpu.pipeline_mode<synchronous>, transform_indices = @transform_5, window_bounds = array<i64: 128, 128>}, {pipeline_mode = #tpu.pipeline_mode<synchronous>, transform_indices = @transform_6, window_bounds = array<i64: 1, 128>}, {pipeline_mode = #tpu.pipeline_mode<synchronous>, transform_indices = @transform_7, window_bounds = array<i64: 128, 32>}, {pipeline_mode = #tpu.pipeline_mode<synchronous>, transform_indices = @transform_8, window_bounds = array<i64: 1, 32>}, {transform_indices = @transform_9, window_bounds = array<i64: 1, 4, 128>}]} {
    %c0 = arith.constant 0 : index
    %c0_0 = arith.constant 0 : index
    %c0_1 = arith.constant 0 : index
    %0 = vector.load %arg1[%c0, %c0_0, %c0_1] : memref<1x4x128xbf16, #tpu.memory_space<vmem>>, vector<1x4x128xbf16>
    %1 = vector.shape_cast %0 : vector<1x4x128xbf16> to vector<4x128xbf16>
    %c0_2 = arith.constant 0 : index
    %c0_3 = arith.constant 0 : index
    %2 = vector.load %arg3[%c0_2, %c0_3] : memref<128x32xbf16, #tpu.memory_space<vmem>>, vector<128x32xbf16>
    %cst = arith.constant dense<0.000000e+00> : vector<4x32xf32>
    %3 = tpu.matmul %1, %2, %cst {dimension_numbers = #tpu.dot_dimension_numbers<[1], [0], [0], [1], [0, 0, 1, 1], [], []>} : vector<4x128xbf16>, vector<128x32xbf16>, vector<4x32xf32> -> vector<4x32xf32>
    %c0_4 = arith.constant 0 : index
    %c0_5 = arith.constant 0 : index
    %4 = vector.load %arg4[%c0_4, %c0_5] : memref<1x32xf32, #tpu.memory_space<vmem>>, vector<1x32xf32>
    %5 = vector.broadcast %4 : vector<1x32xf32> to vector<4x32xf32>
    %6 = arith.addf %3, %5 : vector<4x32xf32>
    %7 = arith.mulf %6, %6 : vector<4x32xf32>
    %cst_6 = arith.constant dense<0.000000e+00> : vector<4xf32>
    %8 = vector.multi_reduction <add>, %7, %cst_6 [1] : vector<4x32xf32> to vector<4xf32>
    %9 = vector.shape_cast %8 : vector<4xf32> to vector<4x1xf32>
    %cst_7 = arith.constant 1.000000e-24 : f32
    %10 = vector.broadcast %cst_7 : f32 to vector<4x1xf32>
    %11 = arith.maximumf %9, %10 : vector<4x1xf32>
    %12 = math.rsqrt %11 : vector<4x1xf32>
    %13 = vector.broadcast %12 : vector<4x1xf32> to vector<4x32xf32>
    %14 = arith.mulf %6, %13 : vector<4x32xf32>
    %cst_8 = arith.constant dense<0.000000e+00> : vector<4x4xf32>
    %15 = tpu.matmul %14, %14, %cst_8 {dimension_numbers = #tpu.dot_dimension_numbers<[1], [1], [0], [0], [0, 0, 1, 0], [], []>} : vector<4x32xf32>, vector<4x32xf32>, vector<4x4xf32> -> vector<4x4xf32>
    %c0_9 = arith.constant 0 : index
    %c0_10 = arith.constant 0 : index
    %c0_11 = arith.constant 0 : index
    %16 = vector.load %arg2[%c0_9, %c0_10, %c0_11] : memref<1x4x64xbf16, #tpu.memory_space<vmem>>, vector<1x4x64xbf16>
    %17 = vector.shape_cast %16 : vector<1x4x64xbf16> to vector<4x64xbf16>
    %c0_12 = arith.constant 0 : index
    %c0_13 = arith.constant 0 : index
    %18 = vector.load %arg5[%c0_12, %c0_13] : memref<64x128xbf16, #tpu.memory_space<vmem>>, vector<64x128xbf16>
    %cst_14 = arith.constant dense<0.000000e+00> : vector<4x128xf32>
    %19 = tpu.matmul %17, %18, %cst_14 {dimension_numbers = #tpu.dot_dimension_numbers<[1], [0], [0], [1], [0, 0, 1, 1], [], []>} : vector<4x64xbf16>, vector<64x128xbf16>, vector<4x128xf32> -> vector<4x128xf32>
    %c0_15 = arith.constant 0 : index
    %c0_16 = arith.constant 0 : index
    %20 = vector.load %arg6[%c0_15, %c0_16] : memref<128x128xbf16, #tpu.memory_space<vmem>>, vector<128x128xbf16>
    %cst_17 = arith.constant dense<0.000000e+00> : vector<4x128xf32>
    %21 = tpu.matmul %1, %20, %cst_17 {dimension_numbers = #tpu.dot_dimension_numbers<[1], [0], [0], [1], [0, 0, 1, 1], [], []>} : vector<4x128xbf16>, vector<128x128xbf16>, vector<4x128xf32> -> vector<4x128xf32>
    %22 = arith.addf %19, %21 : vector<4x128xf32>
    %c0_18 = arith.constant 0 : index
    %c0_19 = arith.constant 0 : index
    %23 = vector.load %arg7[%c0_18, %c0_19] : memref<1x128xf32, #tpu.memory_space<vmem>>, vector<1x128xf32>
    %24 = vector.broadcast %23 : vector<1x128xf32> to vector<4x128xf32>
    %25 = arith.addf %22, %24 : vector<4x128xf32>
    %cst_20 = arith.constant 0.000000e+00 : f32
    %26 = vector.broadcast %cst_20 : f32 to vector<4x128xf32>
    %27 = arith.maximumf %25, %26 : vector<4x128xf32>
    %28 = arith.truncf %27 : vector<4x128xf32> to vector<4x128xbf16>
    %c0_21 = arith.constant 0 : index
    %c0_22 = arith.constant 0 : index
    %29 = vector.load %arg8[%c0_21, %c0_22] : memref<128x32xbf16, #tpu.memory_space<vmem>>, vector<128x32xbf16>
    %cst_23 = arith.constant dense<0.000000e+00> : vector<4x32xf32>
    %30 = tpu.matmul %28, %29, %cst_23 {dimension_numbers = #tpu.dot_dimension_numbers<[1], [0], [0], [1], [0, 0, 1, 1], [], []>} : vector<4x128xbf16>, vector<128x32xbf16>, vector<4x32xf32> -> vector<4x32xf32>
    %c0_24 = arith.constant 0 : index
    %c0_25 = arith.constant 0 : index
    %31 = vector.load %arg9[%c0_24, %c0_25] : memref<1x32xf32, #tpu.memory_space<vmem>>, vector<1x32xf32>
    %32 = vector.broadcast %31 : vector<1x32xf32> to vector<4x32xf32>
    %33 = arith.addf %30, %32 : vector<4x32xf32>
    %cst_26 = arith.constant 0.000000e+00 : f32
    %34 = vector.broadcast %cst_26 : f32 to vector<4x92xf32>
    %35 = tpu.concatenate %33, %15, %34 in 1 : vector<4x32xf32>, vector<4x4xf32>, vector<4x92xf32> -> vector<4x128xf32>
    %c0_27 = arith.constant 0 : index
    %c0_28 = arith.constant 0 : index
    %c0_29 = arith.constant 0 : index
    %36 = vector.load %arg10[%c0_27, %c0_28, %c0_29] : memref<1x4x128xf32, #tpu.memory_space<vmem>>, vector<1x4x128xf32>
    %37 = vector.shape_cast %36 : vector<1x4x128xf32> to vector<4x128xf32>
    %38 = vector.shape_cast %35 : vector<4x128xf32> to vector<1x4x128xf32>
    tpu.vector_store %arg10[%c0_27, %c0_28, %c0_29], %38 {strides = array<i32>} : memref<1x4x128xf32, #tpu.memory_space<vmem>>, vector<1x4x128xf32>,
    return
  }
  func.func @transform_0(%arg0: i32) -> (i32, i32, i32) {
    %c0_i32 = arith.constant 0 : i32
    %c0_i32_0 = arith.constant 0 : i32
    %c0_i32_1 = arith.constant 0 : i32
    return %arg0, %c0_i32, %c0_i32_0 : i32, i32, i32
  }
  func.func @transform_1(%arg0: i32) -> (i32, i32, i32) {
    %c0_i32 = arith.constant 0 : i32
    %c0_i32_0 = arith.constant 0 : i32
    %c0_i32_1 = arith.constant 0 : i32
    return %arg0, %c0_i32, %c0_i32_0 : i32, i32, i32
  }
  func.func @transform_2(%arg0: i32) -> (i32, i32) {
    %c0_i32 = arith.constant 0 : i32
    %c0_i32_0 = arith.constant 0 : i32
    %c0_i32_1 = arith.constant 0 : i32
    return %c0_i32, %c0_i32_0 : i32, i32
  }
  func.func @transform_3(%arg0: i32) -> (i32, i32) {
    %c0_i32 = arith.constant 0 : i32
    %c0_i32_0 = arith.constant 0 : i32
    %c0_i32_1 = arith.constant 0 : i32
    return %c0_i32, %c0_i32_0 : i32, i32
  }
  func.func @transform_4(%arg0: i32) -> (i32, i32) {
    %c0_i32 = arith.constant 0 : i32
    %c0_i32_0 = arith.constant 0 : i32
    %c0_i32_1 = arith.constant 0 : i32
    return %c0_i32, %c0_i32_0 : i32, i32
  }
  func.func @transform_5(%arg0: i32) -> (i32, i32) {
    %c0_i32 = arith.constant 0 : i32
    %c0_i32_0 = arith.constant 0 : i32
    %c0_i32_1 = arith.constant 0 : i32
    return %c0_i32, %c0_i32_0 : i32, i32
  }
  func.func @transform_6(%arg0: i32) -> (i32, i32) {
    %c0_i32 = arith.constant 0 : i32
    %c0_i32_0 = arith.constant 0 : i32
    %c0_i32_1 = arith.constant 0 : i32
    return %c0_i32, %c0_i32_0 : i32, i32
  }
  func.func @transform_7(%arg0: i32) -> (i32, i32) {
    %c0_i32 = arith.constant 0 : i32
    %c0_i32_0 = arith.constant 0 : i32
    %c0_i32_1 = arith.constant 0 : i32
    return %c0_i32, %c0_i32_0 : i32, i32
  }
  func.func @transform_8(%arg0: i32) -> (i32, i32) {
    %c0_i32 = arith.constant 0 : i32
    %c0_i32_0 = arith.constant 0 : i32
    %c0_i32_1 = arith.constant 0 : i32
    return %c0_i32, %c0_i32_0 : i32, i32
  }
  func.func @transform_9(%arg0: i32) -> (i32, i32, i32) {
    %c0_i32 = arith.constant 0 : i32
    %c0_i32_0 = arith.constant 0 : i32
    %c0_i32_1 = arith.constant 0 : i32
    return %arg0, %c0_i32, %c0_i32_0 : i32, i32, i32
  }
}

</mosaic_0001>

<bundles_post_ra>
// kernel: tpu_custom_call.1
= control target key start
LH: loop header
LB: loop body
LE: loop exit
PB: predicated region body
PF: predicated region fallthrough
CT: control target
= control target key end

     0   :  { %14 = vsyncpa [#allocation3], 0  ;;  %s1284_s0 = inlined_call_operand.vmem [shape: bf16[2,4,128], index: 0, kind: input, shape index: {}]   ;;  %s1285_s1 = inlined_call_operand.vmem [shape: bf16[2,4,64], index: 1, kind: input, shape index: {}]   ;;  %s1286_s2 = inlined_call_operand.vmem [shape: bf16[128,32], index: 2, kind: input, shape index: {}]   ;;  %s1287_s3 = inlined_call_operand.vmem [shape: f32[1,32], index: 3, kind: input, shape index: {}]   ;;  %s1288_s4 = inlined_call_operand.vmem [shape: bf16[64,128], index: 4, kind: input, shape index: {}]   ;;  %s1289_s5 = inlined_call_operand.vmem [shape: bf16[128,128], index: 5, kind: input, shape index: {}]   ;;  %s1290_s6 = inlined_call_operand.vmem [shape: f32[1,128], index: 6, kind: input, shape index: {}]   ;;  %s1291_s7 = inlined_call_operand.vmem [shape: bf16[128,32], index: 7, kind: input, shape index: {}]   ;;  %s1292_s8 = inlined_call_operand.vmem [shape: f32[1,32], index: 8, kind: input, shape index: {}]   ;;  %s1293_s9 = inlined_call_operand.hbm [shape: f32[2,4,128], index: 9, kind: output, shape index: {}]  }
   0x1   :  { %16 = vsyncpa [#allocation3 + $0x1], 0  ;;  %s1093_s30 = smov 0   ;;  %s1095_s10 = smov 0  }
   0x2   :  { %s1097_s11 = smov 0   ;;  %s1099_s12 = smov 0  }
   0x3 LB: > { %s1114_s13 = sadd.s32 4294967295, %s1040_s12   ;;  %s779_s14 = sadd.s32 4294967294, %s1040_s12   ;;  %s1040_s12 = sphi %s1099_s12, %s1299_s12   ;;  %s1036_s11 = sphi %s1097_s11, %s1298_s11   ;;  %s1032_s10 = sphi %s1095_s10, %s1297_s10   ;;  %s1028_s30 = sphi %s1093_s30, %s1296_s30  }
   0x4   : > { %s1118_s15 = sadd.s32 1, %s1040_s12   ;;  %s228_s16 = sadd.s32 1, %s1036_s11 }
   0x5   : > { %s225_s17 = ssub.s32 %s1040_s12, %s1118_s15  ;;  %p238_p0 = scmp.ne.s32.totalorder %s1036_s11, %s1032_s10 }
   0x6   : > { %p226_p1 = scmp.eq.s32.totalorder %s225_s17, 0  ;;  %p239_p2 = scmp.eq.s32.totalorder %s1114_s13, 1 }
   0x7   : > { %p244_p3 = scmp.ne.s32.totalorder %s1032_s10, %s1028_s30  ;;  %p245_p4 = scmp.eq.s32.totalorder %s779_s14, 1 }
   0x8   : > { %s1129_s18 = scalar_select %p226_p1, %s1036_s11, %s228_s16  }
   0x9   : > { %p1131_p5 = por %p239_p2, %p238_p0  ;;  %p1135_p6 = por %p245_p4, %p244_p3 }
   0xa   : > { %p782_p7 = scmp.ge.s32.totalorder %s1040_s12, 1  ;;  %p298_p8 = scmp.lt.s32.totalorder %s1040_s12, 3 }
   0xc   : > { %p299_p9 = pnand %p782_p7, %p298_p8 }
   0xd   : > { %p337_p10 = scmp.lt.s32.totalorder (!%p299_p9), %s1114_s13, 1  ;;  %s1042_s22 = smov (!%p299_p9), 32  }
   0xe   : > { %302 = sbr.rel (%p299_p9) target bundleno = 613 (0x265), region = 56  ;;  %s334_s26 = sand.u32 (!%p299_p9), 1, %s1032_s10  }
   0xf   : > { %s783_s27 = sshll.u32 (!%p299_p9), %s334_s26, 2  ;;  %s902_s28 = sshll.u32 (!%p299_p9), %s1114_s13, 2 }
  0x10   : > { %s703_s16 = scalar_lea.hbm (!%p299_p9), %s1293_s9, %s902_s28  ;;  %s336_s17 = scalar_lea.vmem (!%p299_p9), [#allocation2], %s783_s27 }
  0x13   : > { %v912_v0 = vld [vmem:[%s1286_s2 + $0x38] sm:$0xff]  ;;  %v911_v1 = vld [vmem:[%s1286_s2 + $0x30] sm:$0xff]  ;;  %v910_v2 = vld [vmem:[%s1286_s2 + $0x28] sm:$0xff]  ;;  %s1161_s21 = scalar_select %p337_p10, %s1114_s13, 1  ;;  %vm429_vm0 = vcmask 257024   ;;  %vm445_vm4 = vcmask 261120  }
  0x14   : > { %415 = vmatpush.bf16.msra.mxu0 %v912_v0  ;;  %v909_v3 = vld [vmem:[%s1286_s2 + $0x20] sm:$0xff]  ;;  %v908_v4 = vld [vmem:[%s1286_s2 + $0x18] sm:$0xff]  ;;  %v907_v5 = vld [vmem:[%s1286_s2 + $0x10] sm:$0xff]  ;;  %vm579_vm5 = vcmask 523264   ;;  %vm689_vm6 = vcmask 293888   ;;  %s693_s13 = scalar_lea.sflag [#allocation3], %s334_s26 }
  0x15   : > { %v906_v6 = vld [vmem:[%s1286_s2 + $0x8] sm:$0xff]  ;;  %s784_s24 = sshll.u32 %s1161_s21, 1  ;;  %v905_v7 = vld [vmem:[%s1286_s2] sm:$0xff]  ;;  %v924_v9 = vld [vmem:[%s1289_s5 + $0x38] sm:$0xff] }
  0x16   : > { %s340_s29 = scalar_lea.vmem %s1284_s0, %s784_s24  ;;  %542 = vmatpush.bf16.msra.mxu2 %v924_v9  ;;  %v973_v10 = vld [vmem:[%s1287_s3] ss:$0 sm:$0xff]  ;;  %v923_v16 = vld [vmem:[%s1289_s5 + $0x30] sm:$0xff]  ;;  %v922_v17 = vld [vmem:[%s1289_s5 + $0x28] sm:$0xff]  ;;  %s344_s23 = scalar_lea.vmem %s1285_s1, %s784_s24 }
  0x17   : > { %v346_v8 = vld [vmem:[%s340_s29] sm:$0x3]  ;;  %v920_v19 = vld [vmem:[%s1289_s5 + $0x18] sm:$0xff]  ;;  %v919_v20 = vld [vmem:[%s1289_s5 + $0x10] sm:$0xff]  ;;  %s998_s29 = scalar_lea.hbm %s1293_s9, 8 }
  0x18   : > { %416 = vmatpush.bf16.msra.mxu0 %v911_v1  ;;  %v921_v18 = vld [vmem:[%s1289_s5 + $0x20] sm:$0xff]  ;;  %v918_v21 = vld [vmem:[%s1289_s5 + $0x8] sm:$0xff]  ;;  %v932_v25 = vld [vmem:[%s1291_s7 + $0x38] sm:$0xff] }
  0x19   : > { %v917_v22 = vld [vmem:[%s1289_s5] sm:$0xff]  ;;  %671 = vmatpush.bf16.msra.mxu1 %v932_v25  ;;  %v931_v27 = vld [vmem:[%s1291_s7 + $0x30] sm:$0xff]  ;;  %v930_v30 = vld [vmem:[%s1291_s7 + $0x28] sm:$0xff] }
  0x1a   : > { %543 = vmatpush.bf16.msra.mxu2 %v923_v16  ;;  %v916_v35 = vld [vmem:[%s1288_s4 + $0x18] sm:$0xff]  ;;  %v915_v37 = vld [vmem:[%s1288_s4 + $0x10] sm:$0xff]  ;;  %v914_v38 = vld [vmem:[%s1288_s4 + $0x8] sm:$0xff] }
  0x1b   : > { %v913_v39 = vld [vmem:[%s1288_s4] sm:$0xff]  ;;  %v928_v42 = vld [vmem:[%s1291_s7 + $0x18] sm:$0xff]  ;;  %v927_v44 = vld [vmem:[%s1291_s7 + $0x10] sm:$0xff] }
  0x1c   : > { %417 = vmatpush.bf16.msra.mxu0 %v910_v2  ;;  %v469_v40 = vld [vmem:[%s344_s23] sm:$0x3]  ;;  %v926_v46 = vld [vmem:[%s1291_s7 + $0x8] sm:$0xff]  ;;  %s707_s23 = sshll.u32 %s703_s16, 4  ;;  %s708_s23 = int_to_ptr.hbm [resolvable:$true] %s707_s23 }
  0x1d   : > { %672 = vmatpush.bf16.msra.mxu1 %v931_v27  ;;  %v929_v41 = vld [vmem:[%s1291_s7 + $0x20] sm:$0xff]  ;;  %s992_s25 = sshra.s32 %s708_s23, 4  ;;  %s993_s25 = int_to_ptr.hbm [resolvable:$true] %s992_s25 }
  0x1e   : > { %544 = vmatpush.bf16.msra.mxu2 %v922_v17  ;;  %v925_v47 = vld [vmem:[%s1291_s7] sm:$0xff]  ;;  %s994_s21 = scalar_lea.hbm %s993_s25, 4  ;;  %p999_p0 = scmp.lt.s32.totalorder %s993_s25, %s1293_s9 }
  0x1f   : > { %v974_v49 = vld [vmem:[%s1290_s6] ss:$0 sm:$0xff]  ;;  %p995_p11 = scmp.ne.s32.totalorder %s993_s25, %s994_s21  ;;  %p1000_p1 = scmp.lt.s32.totalorder %s998_s29, %s994_s21 }
  0x20   : > { %418 = vmatpush.bf16.msra.mxu0 %v909_v3  ;;  %v975_v56 = vld [vmem:[%s1292_s8] ss:$0 sm:$0xff] }
  0x21   : > { %673 = vmatpush.bf16.msra.mxu1 %v930_v30  ;;  %p996_p12 = pnand %p995_p11, %p1131_p5  ;;  %p1001_p2 = por %p1000_p1, %p999_p0 }
  0x22   : > { %545 = vmatpush.bf16.msra.mxu2 %v921_v18 }
  0x23   : > { %p997_p13 = pneg %p996_p12 }
  0x24   : > { %419 = vmatpush.bf16.msra.mxu0 %v908_v4 }
  0x25   : > { %674 = vmatpush.bf16.msra.mxu1 %v929_v41  ;;  %p1002_p3 = pnand %p1001_p2, %p997_p13 }
  0x26   : > { %546 = vmatpush.bf16.msra.mxu2 %v920_v19 }
  0x28   : > { %420 = vmatpush.bf16.msra.mxu0 %v907_v5 }
  0x29   : > { %675 = vmatpush.bf16.msra.mxu1 %v928_v42 }
  0x2a   : > { %547 = vmatpush.bf16.msra.mxu2 %v919_v20 }
  0x2c   : > { %421 = vmatpush.bf16.msra.mxu0 %v906_v6 }
  0x2d   : > { %676 = vmatpush.bf16.msra.mxu1 %v927_v44 }
  0x2e   : > { %548 = vmatpush.bf16.msra.mxu2 %v918_v21 }
  0x30   : > { %422 = vmatpush.bf16.msra.mxu0 %v905_v7 }
  0x31   : > { %677 = vmatpush.bf16.msra.mxu1 %v926_v46 }
  0x32   : > { %549 = vmatpush.bf16.msra.mxu2 %v917_v22 }
  0x33   : > { %423 = vmatmul.bf16.vlgmr.msra.gmra.mxu0 %v346_v8 }
  0x35   : > { %550 = vmatmul.bf16.vlgmr.msra.gmra.mxu2 %v346_v8  ;;  %678 = vmatpush.bf16.msra.mxu1 %v925_v47 }
  0xb0   : > { %v424_v11 = vpop.f32.mrf.mxu0 }
  0xb1   : > { %v425_v12 = vadd.f32 %v973_v10, %v424_v11 }
  0xb3   : > { %v428_v13 = vmul.f32 %v425_v12, %v425_v12 }
  0xb5   : > { %v430_v14 = vsel %vm429_vm0, %v428_v13, 0.0 }
  0xb6   : > { %431 = vadd.xlane.f32.xlu0 %v430_v14 }
  0xb8   : > { %v426_v15 = vpop.f32.mrf.mxu0  ;;  %v551_v43 = vpop.f32.mrf.mxu2 }
  0xc0   : > { %v553_v45 = vpop.f32.mrf.mxu2 }
 0x129   : > { %v432_v23 = vpop.xlane.xlu0 %431 }
 0x12a   : > { %v433_v24 = vmax.f32 %v432_v23, 1e-24 }
 0x12c   : > { %976 = vrsqrt.f32 %v433_v24  ;;  %vm440_vm2 = vweird.f32 %v433_v24 }
 0x132   : > { %v977_v26 = vpop.eup %976 }
 0x133   : > { %v435_v28 = vmul.f32 %v977_v26, %v433_v24  ;;  %vm441_vm1 = vweird.f32 %v977_v26 }
 0x134   : > { %vm442_vm3 = vmor %vm440_vm2, %vm441_vm1 }
 0x135   : > { %v436_v29 = vmul.f32 %v977_v26, %v435_v28 }
 0x137   : > { %v437_v31 = vmul.f32 0.5, %v436_v29 }
 0x139   : > { %v438_v32 = vsub.f32 1.5, %v437_v31 }
 0x13b   : > { %v439_v33 = vmul.f32 %v977_v26, %v438_v32 }
 0x13d   : > { %v443_v34 = vsel %vm442_vm3, %v977_v26, %v439_v33 }
 0x13e   : > { %v444_v36 = vmul.f32 %v443_v34, %v425_v12 }
 0x140   : > { %818 = vmatpush.xpose.msk.msra.mxu3 %vm445_vm4, %v444_v36 }
 0x143   : > { %819 = vmatmul.msk.f32.vlgmr.msra.gmra.mxu3 %vm445_vm4, %v444_v36 }
 0x144   : > { %587 = vmatpush.bf16.msrb.mxu3 %v916_v35 }
 0x148   : > { %588 = vmatpush.bf16.msrb.mxu3 %v915_v37 }
 0x14c   : > { %589 = vmatpush.bf16.msrb.mxu3 %v914_v38 }
 0x150   : > { %590 = vmatpush.bf16.msrb.mxu3 %v913_v39 }
 0x153   : > { %868 = vmatmul.msk.bf16.vlgmr.msrb.gmra.mxu3 %vm579_vm5, %v469_v40 }
 0x1c6   : > { %v466_v48 = vpop.f32.mrf.mxu3 }
 0x1c7   : > { %685 = vrot.lane.b32.xlu0 %v466_v48, %s1042_s22  ;;  %s705_s22 = sshll.u32 %s336_s17, 4  ;;  %s706_s22 = int_to_ptr.vmem [resolvable:$true] %s705_s22 }
 0x1d6   : > { %v592_v50 = vpop.f32.mrf.mxu3 }
 0x1d7   : > { %v593_v51 = vadd.f32 %v592_v50, %v551_v43 }
 0x1d9   : > { %v600_v52 = vadd.f32 %v974_v49, %v593_v51 }
 0x1db   : > { %v601_v53 = vmax.f32 %v600_v52, 0.0 }
 0x1dd   : > { %v602_v54 = vpack.c.bf16 %v601_v53, %v601_v53 }
 0x1de   : > { %v594_v55 = vpop.f32.mrf.mxu3 }
 0x1df   : > { %679 = vmatmul.bf16.vlgmr.msra.gmra.mxu1 %v602_v54 }
 0x239   : > { %v686_v59 = vpop.permute.xlu0 %685 }
 0x25c   : > { %v680_v57 = vpop.f32.mrf.mxu1 }
 0x25d   : > { %v681_v58 = vadd.f32 %v975_v56, %v680_v57 }
 0x25f   : > { %v688_v60 = vsel %vm445_vm4, %v681_v58, %v686_v59 }
 0x260   : > { %v690_v61 = vsel %vm689_vm6, %v688_v60, 0.0 }
 0x261   : > { %691 = vst [vmem:[%s336_s17] sm:$0xf] %v690_v61 }
 0x262   : > { %1005 = shalt.err (!%p1002_p3)
}
 0x263   : > { %933 = dma.vmem_to_hbm [thread:$0]  (%p1131_p5), %s706_s22, 64, %s708_s23, %s693_s13  }
 0x264   : > { %v682_v62 = vpop.f32.mrf.mxu1 }
 0x265 PF: > { %p939_p4 = scmp.ge.s32.totalorder %s1040_s12, 2  ;;  %s719_s26 = sand.u32 1, %s1028_s30  }
 0x266   : > { %s720_s16 = scalar_lea.sflag [#allocation3], %s719_s26 }
 0x267   : > { %p936_p7 = pnand %p939_p4, %p1135_p6 }
 0x269   : > { %p937_p8 = pneg %p936_p7 }
 0x26b   : > { %1023 = dma.done.wait (%p937_p8), %s720_s16, 64  }
 0x26c   : > { %1025 = vsyncadd (%p937_p8), %s720_s16, 4294967232  ;;  %p19_p9 = scmp.ge.s32.totalorder %s1118_s15, 4   ;;  %s1296_s30 = smov %s1032_s10 }
 0x26d   : > { %s1297_s10 = smov %s1036_s11  ;;  %s1298_s11 = smov %s1129_s18 }
 0x26e   : > { %s1299_s12 = smov %s1118_s15  ;;  %21 = sbr.rel (!%p19_p9) target bundleno = 3 (0x3), region = 94 }
 0x273   :  { %726 = vsyncpa [#allocation3], 1 }
 0x274   :  { %728 = vsyncpa [#allocation3 + $0x1], 1 }

</bundles_post_ra>
